<compile_context>
chip_gen: v5e
topology: v5e:2x2
jax: 0.10.0
libtpu: 0.0.40
codegen_flags: <defaults>
</compile_context>

<pallas_src>
import numpy as np
import jax
import jax.numpy as jnp
from jax import lax
from jax.experimental import pallas as pl
from jax.experimental.pallas import tpu as pltpu

NUM_PRED = 4
MAX_TILE_N = 32768  # lanes (nodes) per grid step cap; multiple of 128


def _mask_kernel(deg_ref, mask_ref):
    """deg_ref: [1, TILE_N] f32 (nodes on lanes) -> mask_ref: [num_pred, TILE_N] i8."""
    num_pred, tn = mask_ref.shape
    # torch._cast_Int(torch.round(.)) then min(num_pred, max(0, .)):
    # jnp.round is half-to-even, same as torch.round; clipping in float before
    # the int cast also guards against overflow for wild predictions.
    deg_i = jnp.clip(jnp.round(deg_ref[...]), 0.0, float(num_pred)).astype(jnp.int32)
    j_i = lax.broadcasted_iota(jnp.int32, (num_pred, tn), 0)   # slot index j on sublanes
    mask_ref[...] = (j_i < deg_i).astype(jnp.int8)             # broadcast over nodes (lanes)


def mend_graph(x, pred_missing, gen_feats, num_pred=NUM_PRED, max_tile_n=MAX_TILE_N):
    """Pallas/JAX implementation of MendGraph_dgl.forward.

    Returns (all edge-related outputs in the lane-dense [num_pred, num_node] layout):
      fill_feats : [num_node*(1+num_pred), F]        mended node features (vstack order)
      edge_mask  : [num_pred, num_node] int8         1 where edge (src, dst) is added
      src, dst   : [num_pred, num_node] int32        candidate edge endpoints
    Edge (src[j, i], dst[j, i]) exists iff edge_mask[j, i] == 1.
    """
    num_node, num_feature = x.shape

    # --- 1. feature "mend": vstack(original feats, generated feats) ----------
    # Pure HBM copy; XLA concatenate already streams at roofline.
    # TODO(synk): eliminate by BlockSpec routing in the downstream consumer.
    gen = gen_feats.reshape(num_node * num_pred, num_feature)
    fill_feats = jnp.concatenate([x, gen], axis=0)

    # --- 2. predicted degree -> edge mask (single/few large lane-dense tiles) -
    deg = pred_missing.reshape(1, num_node).astype(jnp.float32)   # nodes on lane axis
    n_pad128 = pl.cdiv(num_node, 128) * 128
    tile_n = n_pad128 if n_pad128 <= max_tile_n else max_tile_n
    n_pad = pl.cdiv(num_node, tile_n) * tile_n
    if n_pad != num_node:
        deg = jnp.pad(deg, ((0, 0), (0, n_pad - num_node)))       # pad deg=0 -> no edges

    mask_lane = pl.pallas_call(
        _mask_kernel,
        out_shape=jax.ShapeDtypeStruct((num_pred, n_pad), jnp.int8),
        grid=(n_pad // tile_n,),
        in_specs=[pl.BlockSpec((1, tile_n), lambda i: (0, i))],
        out_specs=pl.BlockSpec((num_pred, tile_n), lambda i: (0, i)),
        compiler_params=pltpu.CompilerParams(
            dimension_semantics=("parallel",),
            vmem_limit_bytes=32 * 1024 * 1024,
        ),
    )(deg)
    edge_mask = mask_lane[:, :num_node]                           # stay lane-dense; no transpose

    # --- 3. candidate edge endpoints: pure functions of (i, j) ---------------
    # Input-independent; computed outside the kernel, in the SAME lane-dense
    # [num_pred, num_node] layout as the mask.
    j_i = lax.broadcasted_iota(jnp.int32, (num_pred, num_node), 0)
    i_i = lax.broadcasted_iota(jnp.int32, (num_pred, num_node), 1)
    src = i_i
    dst = num_node + i_i * num_pred + j_i
    return fill_feats, edge_mask, src, dst


if __name__ == "__main__":
    # Small deterministic example: 8 nodes, 32-dim features, num_pred=4.
    num_node, num_feature = 8, 32
    key = jax.random.PRNGKey(0)
    k1, k2, k3 = jax.random.split(key, 3)

    x = jax.random.normal(k1, (num_node, num_feature), dtype=jnp.float32)
    # predicted missing degrees, some negative / larger than num_pred
    pred_missing = jax.random.uniform(k2, (num_node,), minval=-1.5,
                                      maxval=NUM_PRED + 1.5, dtype=jnp.float32)
    gen_feats = jax.random.normal(k3, (num_node, NUM_PRED * num_feature),
                                  dtype=jnp.float32)

    mend = jax.jit(mend_graph, static_argnames=("num_pred", "max_tile_n"))
    fill, mask, src, dst = jax.block_until_ready(mend(x, pred_missing, gen_feats))

    # ---- reference (mirrors the PyTorch loop semantics) ----------------------
    x_np = np.asarray(x)
    gen_np = np.asarray(gen_feats).reshape(num_node * NUM_PRED, num_feature)
    fill_ref = np.vstack([x_np, gen_np])
    deg_int = np.round(np.asarray(pred_missing)).astype(np.int32)
    ref_edges = []
    for i in range(num_node):
        for j in range(min(NUM_PRED, max(0, int(deg_int[i])))):
            ref_edges.append((i, num_node + i * NUM_PRED + j))

    got_edges = [(int(s), int(d))
                 for s, d, m in zip(np.asarray(src).ravel(),
                                    np.asarray(dst).ravel(),
                                    np.asarray(mask).ravel()) if m]

    assert np.allclose(np.asarray(fill), fill_ref), "fill_feats mismatch"
    assert sorted(got_edges) == sorted(ref_edges), "edge set mismatch"
    print("KERNEL_OK")
</pallas_src>

<mosaic_0001>
module attributes {stable_mosaic.version = 11 : i64} {
  func.func @_mask_kernel(%arg0: i32, %arg1: memref<1x128xf32, #tpu.memory_space<vmem>>, %arg2: memref<4x128xi8, #tpu.memory_space<vmem>>) attributes {dimension_semantics = [#tpu.dimension_semantics<parallel>], iteration_bounds = array<i64: 1>, scalar_prefetch = 0 : i64, scratch_operands = 0 : i64, tpu.core_type = #tpu.core_type<tc>, window_params = [{transform_indices = @transform_0, window_bounds = array<i64: 1, 128>}, {transform_indices = @transform_1, window_bounds = array<i64: 4, 128>}]} {
    %c0 = arith.constant 0 : index
    %c0_0 = arith.constant 0 : index
    %0 = vector.load %arg1[%c0, %c0_0] : memref<1x128xf32, #tpu.memory_space<vmem>>, vector<1x128xf32>
    %1 = math.roundeven %0 : vector<1x128xf32>
    %cst = arith.constant 0.000000e+00 : f32
    %cst_1 = arith.constant 4.000000e+00 : f32
    %2 = vector.broadcast %cst : f32 to vector<1x128xf32>
    %3 = arith.maximumf %2, %1 : vector<1x128xf32>
    %4 = vector.broadcast %cst_1 : f32 to vector<1x128xf32>
    %5 = arith.minimumf %4, %3 : vector<1x128xf32>
    %6 = arith.fptosi %5 : vector<1x128xf32> to vector<1x128xi32>
    %7 = tpu.iota {dimensions = array<i32: 0>} : vector<4x128xi32>
    %8 = vector.broadcast %6 : vector<1x128xi32> to vector<4x128xi32>
    %9 = arith.cmpi slt, %7, %8 : vector<4x128xi32>
    %10 = arith.extui %9 : vector<4x128xi1> to vector<4x128xi8>
    %c0_2 = arith.constant 0 : index
    %c0_3 = arith.constant 0 : index
    %11 = vector.load %arg2[%c0_2, %c0_3] : memref<4x128xi8, #tpu.memory_space<vmem>>, vector<4x128xi8>
    tpu.vector_store %arg2[%c0_2, %c0_3], %10 {strides = array<i32>} : memref<4x128xi8, #tpu.memory_space<vmem>>, vector<4x128xi8>,
    return
  }
  func.func @transform_0(%arg0: i32) -> (i32, i32) {
    %c0_i32 = arith.constant 0 : i32
    %c0_i32_0 = arith.constant 0 : i32
    return %c0_i32, %arg0 : i32, i32
  }
  func.func @transform_1(%arg0: i32) -> (i32, i32) {
    %c0_i32 = arith.constant 0 : i32
    %c0_i32_0 = arith.constant 0 : i32
    return %c0_i32, %arg0 : i32, i32
  }
}

</mosaic_0001>

<bundles_post_ra>
// kernel: mend_graph.1
= control target key start
LH: loop header
LB: loop body
LE: loop exit
PB: predicated region body
PF: predicated region fallthrough
CT: control target
= control target key end

     0   :  { %s95_s0 = inlined_call_operand.vmem [shape: f32[1,128], index: 0, kind: input, shape index: {}]   ;;  %s96_s1 = inlined_call_operand.hbm [shape: s8[4,128], index: 1, kind: output, shape index: {}]  }
   0x1   :  { %v11_v0 = vld [vmem:[%s95_s0] sm:$0x1] }
   0x2   :  { %6 = vsyncpa [#allocation3], 0  ;;  %v43_v1 = vmax.f32 %v11_v0, 0.0  ;;  %v16_v2 = vlaneseq  ;;  %v77_v7 = vmov 0   ;;  %s78_s8 = smov [#allocation2]   ;;  %s34_s12 = sshll.u32 %s96_s1, 4  ;;  %s35_s12 = int_to_ptr.hbm [resolvable:$true] %s34_s12 }
   0x3   :  { %s32_s9 = sshll.u32 %s78_s8, 4  ;;  %s33_s9 = int_to_ptr.vmem [resolvable:$true] %s32_s9 }
   0x4   :  { %v44_v3 = vmin.f32 %v43_v1, 4.0  ;;  %v17_v5 = vshrl.u32 %v16_v2, 7 }
   0x6   :  { %v48_v4 = vcvt.f32.s32 %v44_v3 }
   0x8   :  { %v18_v6 = vperm.slane %v48_v4, 0 }
   0xa   :  { %vm19_vm0 = vcmp.lt.s32.totalorder %v17_v5, %v18_v6 }
   0xb   :  { %vm20_vm1 = vmpackc.low %vm19_vm0, %vm19_vm0 }
   0xc   :  { %v21_v8 = vsel %vm20_vm1, 16711935, %v77_v7 }
   0xd   :  { %v23_v9 = vpack.c.b8 %v21_v8, %v21_v8 }
   0xf   :  { %vm24_vm2 = vnez %v23_v9 }
  0x10   :  { %v25_v10 = vsel %vm24_vm2, 16843009, %v77_v7 }
  0x11   :  { %26 = vst [vmem:[#allocation2] sm:$0x1] %v25_v10 }
  0x12   :  { %37 = dma.vmem_to_hbm [thread:$0]  %s33_s9, 16, %s35_s12, [#allocation3]  }
  0x13   :  { %75 = dma.done.wait [#allocation3], 16  }
  0x14   :  { %76 = vsyncadd [#allocation3], 4294967280 }
  0x15   :  { %42 = vsyncpa [#allocation3], 1 }

</bundles_post_ra>
